<compile_context>
chip_gen: v7x
topology: tpu7x:2x2x1
jax: 0.10.0
libtpu: 0.0.40
codegen_flags: <defaults>
</compile_context>

<pallas_src>
import jax
import jax.numpy as jnp
from jax.experimental import pallas as pl
from jax.experimental.pallas import tpu as pltpu


def _whole_array_copy_kernel(x_hbm, o_hbm, sem):
    # One contiguous HBM -> HBM DMA of the entire array.  No VMEM staging,
    # no vector load/store, a single descriptor keeps the DMA engine at full
    # HBM bandwidth regardless of the array's logical shape.
    cp = pltpu.make_async_copy(x_hbm, o_hbm, sem)
    cp.start()
    cp.wait()


def dino_v1_extractor_forward(x: jax.Array, *, copy: bool = True) -> jax.Array:
    """Pallas implementation of DinoV1Extractor.forward (placeholder Identity model).

    x: (B, C, H, W) tensor (NCHW, matching the PyTorch module).
    copy=False: return x directly (zero-cost identity, preferred when the
                caller does not need a distinct output buffer).
    copy=True : materialize a fresh output buffer via one whole-array DMA.
    returns: tensor identical to x (shape, dtype, values).
    """
    if not copy:
        # Identity at the JAX level: no HBM traffic, no kernel launch.
        return x

    if x.ndim == 0 or x.size == 0:
        # Degenerate inputs: nothing worth DMA'ing.
        return x

    nbytes = x.size * x.dtype.itemsize

    return pl.pallas_call(
        _whole_array_copy_kernel,
        out_shape=jax.ShapeDtypeStruct(x.shape, x.dtype),
        # Raw HBM refs; the kernel DMAs them directly (no auto-pipelining,
        # no VMEM tiles, hence no padding / lane-alignment needed).  This is
        # the right layout on all generations, including v7x's 64 MiB VMEM.
        in_specs=[pl.BlockSpec(memory_space=pl.ANY)],
        out_specs=pl.BlockSpec(memory_space=pl.ANY),
        scratch_shapes=[pltpu.SemaphoreType.DMA(())],
        # Accurate byte count (read + write of the whole array) so XLA can
        # overlap surrounding work with the copy instead of treating it as
        # cheap — most important on v5e's ~0.8 TB/s HBM.
        cost_estimate=pl.CostEstimate(
            flops=0, transcendentals=0, bytes_accessed=2 * nbytes
        ),
    )(x)


if __name__ == "__main__":
    # Small NCHW input consistent with the module's expectations:
    # DINO preprocessing yields 3-channel images; use B=2, C=3, H=W=16.
    key = jax.random.PRNGKey(0)
    x = jax.random.normal(key, (2, 3, 16, 16), dtype=jnp.float32)

    # Copy path (default): fresh output buffer, input stays valid.
    y = dino_v1_extractor_forward(x)
    jax.block_until_ready(y)
    assert y.shape == x.shape, (y.shape, x.shape)
    assert y.dtype == x.dtype, (y.dtype, x.dtype)
    assert bool(jnp.array_equal(y, x)), "identity forward (copy path) mismatch"

    # Zero-cost path: identity returned at the JAX level (reviewer-preferred).
    y2 = dino_v1_extractor_forward(x, copy=False)
    jax.block_until_ready(y2)
    assert y2.shape == x.shape and y2.dtype == x.dtype
    assert bool(jnp.array_equal(y2, x)), "identity forward (no-copy path) mismatch"

    print("KERNEL_OK")
</pallas_src>

<mosaic_0001>
module attributes {stable_mosaic.version = 11 : i64} {
  func.func @_whole_array_copy_kernel(%arg0: memref<2x3x16x16xf32, #tpu.memory_space<any>>, %arg1: memref<2x3x16x16xf32, #tpu.memory_space<any>>, %arg2: memref<!tpu.dma_semaphore, #tpu.memory_space<semaphore_mem>>) attributes {dimension_semantics = [], scalar_prefetch = 0 : i64, scratch_operands = 1 : i64, tpu.core_type = #tpu.core_type<tc>} {
    tpu.enqueue_dma source(%arg0 : memref<2x3x16x16xf32, #tpu.memory_space<any>>) target(%arg1 : memref<2x3x16x16xf32, #tpu.memory_space<any>>) target_semaphore(%arg2 : memref<!tpu.dma_semaphore, #tpu.memory_space<semaphore_mem>>)
    tpu.wait_dma2 semaphore(%arg2 : memref<!tpu.dma_semaphore, #tpu.memory_space<semaphore_mem>>) src(%arg0 : memref<2x3x16x16xf32, #tpu.memory_space<any>>) dst(%arg1 : memref<2x3x16x16xf32, #tpu.memory_space<any>>)
    return
  }
}

</mosaic_0001>

<bundles_post_ra>
// kernel: tpu_custom_call.1
= control target key start
LH: loop header
LB: loop body
LE: loop exit
PB: predicated region body
PF: predicated region fallthrough
CT: control target
= control target key end

     0   :  { %s36_s6 = smov [#allocation2]   ;;  %s37_s7 = smov [#allocation3]   ;;  %s55_s0 = inlined_call_operand.hbm [shape: f32[2,3,16,16], index: 0, kind: input, shape index: {}]   ;;  %s56_s1 = inlined_call_operand.hbm [shape: f32[2,3,16,16], index: 1, kind: output, shape index: {}]  }
   0x1   :  { %s38_s8 = smov 0  }
   0x2   :  { %18 = dma.general %s55_s0, 1536, %s56_s1, %s36_s6, %s37_s7, [#allocation4], %s38_s8, 0  }
   0x3   :  { %34 = dma.done.wait [#allocation2], 1536 }
   0x4   :  { %35 = vsyncadd [#allocation2], 4294965760 }
   0x5   :  { %24 = vsyncmov [#allocation2] }
   0x8   :  { %s25_s13 = vpop.sfrf %24 }
   0x9   :  { %p30_p0 = scmp.ne.s32.totalorder %s25_s13, 0 }
   0xb   :  { %29 = shalt.err (%p30_p0)  }

</bundles_post_ra>
